<compile_context>
chip_gen: v5e
topology: v5e:2x2
jax: 0.10.0
libtpu: 0.0.40
codegen_flags: <defaults>
</compile_context>

<pallas_src>
import math
import functools

import jax
import jax.numpy as jnp
from jax import lax
from jax.experimental import pallas as pl
from jax.experimental.pallas import tpu as pltpu


# ----------------------------- shared math -----------------------------------

def _layer_norm(x, w, b, eps=1e-5):
    mu = jnp.mean(x, axis=-1, keepdims=True)
    var = jnp.mean((x - mu) ** 2, axis=-1, keepdims=True)
    return (x - mu) * lax.rsqrt(var + eps) * w + b


def _cdiv(a, b):
    return -(-a // b)


# ----------------------------- kernel ----------------------------------------

def encoder_layer_kernel(
    q_ref, kT_ref, v_ref, x_ref,
    wo_ref, bo_ref,
    ln1w_ref, ln1b_ref,
    w1_ref, b1_ref, w2_ref, b2_ref,
    ln2w_ref, ln2b_ref,
    out_ref,
    oh_slab,                                   # VMEM scratch (q_tile, D) bf16
    *, nhead, head_dim, seq_len, seq_pad,
):
    f32, bf16 = jnp.float32, jnp.bfloat16
    pad_keys = seq_pad != seq_len              # static Python bool
    if pad_keys:
        key_ok = lax.broadcasted_iota(jnp.int32, (1, seq_pad), 1) < seq_len

    # ---- multi-head self-attention --------------------------------------
    # Q is pre-scaled by 1/sqrt(head_dim) (folded into Wq in the wrapper).
    for h in range(nhead):                     # static unroll over heads
        # (TQ, hd) @ (hd, S) -> (TQ, S): K is pre-transposed, leading-dim
        # head indexing, f32 MXU accumulation.
        s = jnp.dot(q_ref[h], kT_ref[h], preferred_element_type=f32)
        if pad_keys:
            s = jnp.where(key_ok, s, -1e30)
        s = s - jnp.max(s, axis=-1, keepdims=True)
        # NOTE: exp kept in f32 for v5e portability (bf16 exp is a v6e/v7x-only
        # EUP optimization; skipped here to keep one precision path).
        p = jnp.exp(s)                          # un-normalized, values <= 1
        denom = jnp.sum(p, axis=-1, keepdims=True)
        oh = jnp.dot(p.astype(bf16), v_ref[h], preferred_element_type=f32)
        # Deferred softmax normalization: scale the (TQ, hd) head output, not
        # the (TQ, S) probability matrix.  EUP reciprocal (free slot).
        oh = oh * pl.reciprocal(denom, approx=True)
        oh_slab[:, h * head_dim:(h + 1) * head_dim] = oh.astype(bf16)

    # Single full-contraction-depth output projection (much better MXU fill
    # than nhead matmuls with K = head_dim).
    attn = jnp.dot(oh_slab[...], wo_ref[...],
                   preferred_element_type=f32) + bo_ref[...]

    # ---- residual + LayerNorm1 -------------------------------------------
    x_t = x_ref[...].astype(f32)
    src = _layer_norm(x_t + attn, ln1w_ref[...], ln1b_ref[...])

    # ---- FFN (bf16 operands, f32 MXU accumulation) -------------------------
    h1 = jnp.maximum(
        jnp.dot(src.astype(bf16), w1_ref[...], preferred_element_type=f32)
        + b1_ref[...], 0.0)
    h2 = jnp.dot(h1.astype(bf16), w2_ref[...],
                 preferred_element_type=f32) + b2_ref[...]

    # ---- residual + LayerNorm2 ---------------------------------------------
    out = _layer_norm(src + h2, ln2w_ref[...], ln2b_ref[...])
    out_ref[...] = out.astype(out_ref.dtype)


# --------------------------- per-generation tuning ----------------------------

def _tpu_tuning():
    """VMEM budget + max query tile, derived from the actual chip."""
    cap = None
    try:
        info = pltpu.get_tpu_info()
        cap = getattr(info, "vmem_capacity_bytes", None)
    except Exception:
        cap = None
    if not cap:
        cap = 64 * 1024 * 1024                       # conservative (v7x-sized)
    cap = int(cap)
    headroom = 12 * 1024 * 1024                      # Mosaic internal scratch
    vmem_limit = max(min(cap - headroom, 100 * 1024 * 1024), 48 * 1024 * 1024)
    max_q_tile = 1024 if cap >= 96 * 1024 * 1024 else 512
    return vmem_limit, max_q_tile


def _pick_tiling(seq_len, batch, max_q_tile):
    """Query tile size + padded sequence length (tile * num_tiles >= seq_len)."""
    num_tiles = max(1, _cdiv(seq_len, max_q_tile))
    # Feed both v7x TensorCores even with tiny batch (harmless elsewhere).
    if batch * num_tiles < 2 and seq_len >= 256:
        num_tiles = 2
    q_tile = _cdiv(seq_len, num_tiles)
    q_tile = _cdiv(q_tile, 8) * 8                    # sublane multiple
    seq_pad = q_tile * num_tiles
    return q_tile, seq_pad, num_tiles


# ----------------------------- wrapper ----------------------------------------

def encoder_layer_pallas(x_bsd, pos_bsd, params, nhead, *,
                         seq_len, q_tile, vmem_limit):
    """One encoder layer.  x_bsd, pos_bsd: (B, S_pad, D) f32."""
    B, S_pad, D = x_bsd.shape
    assert D % nhead == 0
    hd = D // nhead
    num_q_tiles = S_pad // q_tile
    f32, bf16 = jnp.float32, jnp.bfloat16
    scale = 1.0 / math.sqrt(hd)

    # ---- hoisted, fused Q/K/V projection (done once per batch, not per tile).
    # 1/sqrt(hd) folded into Wq/bq at trace time.
    wqk = jnp.concatenate([params["wq"] * scale, params["wk"]], axis=1).astype(bf16)
    bqk = jnp.concatenate([params["bq"] * scale, params["bk"]], axis=1)
    qk_in = (x_bsd + pos_bsd).astype(bf16)
    qk = jnp.einsum("bsd,de->bse", qk_in, wqk,
                    preferred_element_type=f32) + bqk
    q, k = qk[..., :D], qk[..., D:]
    v = jnp.einsum("bsd,de->bse", x_bsd.astype(bf16), params["wv"].astype(bf16),
                   preferred_element_type=f32) + params["bv"]

    # Per-head-leading layouts; K pre-transposed so QK^T is a plain MXU feed.
    q_h = q.reshape(B, S_pad, nhead, hd).transpose(0, 2, 1, 3).astype(bf16)   # (B,nh,S,hd)
    kT_h = k.reshape(B, S_pad, nhead, hd).transpose(0, 2, 3, 1).astype(bf16)  # (B,nh,hd,S)
    v_h = v.reshape(B, S_pad, nhead, hd).transpose(0, 2, 1, 3).astype(bf16)   # (B,nh,S,hd)

    weight_args = (
        params["wo"].astype(bf16), params["bo"],
        params["ln1w"], params["ln1b"],
        params["w1"].astype(bf16), params["b1"],
        params["w2"].astype(bf16), params["b2"],
        params["ln2w"], params["ln2b"],
    )

    def const_spec(shape):
        zeros = (0,) * len(shape)
        # NOTE: pipeline_mode=pl.Buffered(1) would halve weight VMEM (constant
        # index map -> never refetched); skipped to keep compilation risk-free.
        return pl.BlockSpec(shape, lambda b, qt: zeros)

    in_specs = [
        pl.BlockSpec((None, nhead, q_tile, hd), lambda b, qt: (b, 0, qt, 0)),  # Q
        pl.BlockSpec((None, nhead, hd, S_pad), lambda b, qt: (b, 0, 0, 0)),    # K^T
        pl.BlockSpec((None, nhead, S_pad, hd), lambda b, qt: (b, 0, 0, 0)),    # V
        pl.BlockSpec((None, q_tile, D), lambda b, qt: (b, qt, 0)),             # x (residual)
    ] + [const_spec(w.shape) for w in weight_args]

    out_spec = pl.BlockSpec((None, q_tile, D), lambda b, qt: (b, qt, 0))

    kernel = functools.partial(encoder_layer_kernel, nhead=nhead, head_dim=hd,
                               seq_len=seq_len, seq_pad=S_pad)

    return pl.pallas_call(
        kernel,
        out_shape=jax.ShapeDtypeStruct((B, S_pad, D), x_bsd.dtype),
        grid_spec=pltpu.PrefetchScalarGridSpec(
            num_scalar_prefetch=0,
            grid=(B, num_q_tiles),
            in_specs=in_specs,
            out_specs=out_spec,
            scratch_shapes=[pltpu.VMEM((q_tile, D), bf16)],
        ),
        compiler_params=pltpu.CompilerParams(
            dimension_semantics=("parallel", "parallel"),
            vmem_limit_bytes=vmem_limit,
        ),
    )(q_h, kT_h, v_h, x_bsd, *weight_args)


def transformer_encoder(src_sbd, pos_sbd, layer_params_list, nhead):
    """TransformerEncoder.forward.  src/pos: (S, B, D) (PyTorch MHA layout)."""
    S, B, D = src_sbd.shape
    vmem_limit, max_q_tile = _tpu_tuning()
    q_tile, seq_pad, _ = _pick_tiling(S, B, max_q_tile)

    # Single transpose into (B, S, D) for the whole layer stack, one back out.
    x = jnp.transpose(src_sbd, (1, 0, 2))
    pos = jnp.transpose(pos_sbd, (1, 0, 2))
    if seq_pad != S:
        pad = ((0, 0), (0, seq_pad - S), (0, 0))
        x = jnp.pad(x, pad)                   # zero pad rows stay finite
        pos = jnp.pad(pos, pad)
    for params in layer_params_list:          # sequential layer stack
        x = encoder_layer_pallas(x, pos, params, nhead, seq_len=S,
                                 q_tile=q_tile, vmem_limit=vmem_limit)
    if seq_pad != S:
        x = x[:, :S, :]
    # self.norm is None (DETR post-norm default)
    return jnp.transpose(x, (1, 0, 2))


# --------------------------- param init / reference --------------------------

def init_layer_params(key, d_model, nhead, dim_feedforward):
    ks = jax.random.split(key, 8)
    scale = 0.1
    # Weights stored pre-transposed to (in, out) so the kernel does x @ W.
    wq = scale * jax.random.normal(ks[0], (d_model, d_model), jnp.float32)
    wk = scale * jax.random.normal(ks[1], (d_model, d_model), jnp.float32)
    wv = scale * jax.random.normal(ks[2], (d_model, d_model), jnp.float32)
    wo = scale * jax.random.normal(ks[3], (d_model, d_model), jnp.float32)
    w1 = scale * jax.random.normal(ks[4], (d_model, dim_feedforward), jnp.float32)
    w2 = scale * jax.random.normal(ks[5], (dim_feedforward, d_model), jnp.float32)
    return dict(
        wq=wq, wk=wk, wv=wv,
        bq=0.01 * jnp.ones((1, d_model), jnp.float32),
        bk=0.02 * jnp.ones((1, d_model), jnp.float32),
        bv=0.03 * jnp.ones((1, d_model), jnp.float32),
        wo=wo,
        bo=0.01 * jnp.ones((1, d_model), jnp.float32),
        ln1w=jnp.ones((1, d_model), jnp.float32),
        ln1b=jnp.zeros((1, d_model), jnp.float32),
        w1=w1,
        b1=0.01 * jnp.ones((1, dim_feedforward), jnp.float32),
        w2=w2,
        b2=0.01 * jnp.ones((1, d_model), jnp.float32),
        ln2w=jnp.ones((1, d_model), jnp.float32),
        ln2b=jnp.zeros((1, d_model), jnp.float32),
    )


def reference_encoder(src_sbd, pos_sbd, layer_params_list, nhead,
                      match_kernel_precision=False):
    """Pure-JAX reference.  If match_kernel_precision, mirror the kernel's
    bf16-operand / f32-accumulate matmuls and deferred softmax normalization;
    otherwise full f32."""
    f32, bf16 = jnp.float32, jnp.bfloat16
    cast = (lambda a: a.astype(bf16)) if match_kernel_precision else (lambda a: a)

    x = jnp.transpose(src_sbd, (1, 0, 2)).astype(f32)
    pos = jnp.transpose(pos_sbd, (1, 0, 2)).astype(f32)
    B, S, D = x.shape
    hd = D // nhead
    scale = 1.0 / math.sqrt(hd)
    for p in layer_params_list:
        qk_in = x + pos
        q = jnp.einsum("bsd,de->bse", cast(qk_in), cast(p["wq"] * scale),
                       preferred_element_type=f32) + p["bq"] * scale
        k = jnp.einsum("bsd,de->bse", cast(qk_in), cast(p["wk"]),
                       preferred_element_type=f32) + p["bk"]
        v = jnp.einsum("bsd,de->bse", cast(x), cast(p["wv"]),
                       preferred_element_type=f32) + p["bv"]
        qh = cast(q).reshape(B, S, nhead, hd)
        kh = cast(k).reshape(B, S, nhead, hd)
        vh = cast(v).reshape(B, S, nhead, hd)
        s = jnp.einsum("bqhd,bkhd->bhqk", qh, kh, preferred_element_type=f32)
        s = s - s.max(-1, keepdims=True)
        e = jnp.exp(s)
        denom = e.sum(-1, keepdims=True)                       # (B,h,q,1)
        o = jnp.einsum("bhqk,bkhd->bqhd", cast(e), vh,
                       preferred_element_type=f32)
        o = o / jnp.transpose(denom, (0, 2, 1, 3))             # deferred norm
        attn = jnp.einsum("bqhd,hdf->bqf", cast(o),
                          cast(p["wo"]).reshape(nhead, hd, D),
                          preferred_element_type=f32) + p["bo"]
        x = _layer_norm(x + attn, p["ln1w"], p["ln1b"])
        h1 = jnp.maximum(
            jnp.einsum("bsd,df->bsf", cast(x), cast(p["w1"]),
                       preferred_element_type=f32) + p["b1"], 0.0)
        h2 = jnp.einsum("bsf,fd->bsd", cast(h1), cast(p["w2"]),
                        preferred_element_type=f32) + p["b2"]
        x = _layer_norm(x + h2, p["ln2w"], p["ln2b"])
    return x.transpose(1, 0, 2)


# --------------------------------- main ---------------------------------------

def _check(src, pos, layer_params, nhead, run):
    out = jax.block_until_ready(run(src, pos, layer_params, nhead))
    assert out.shape == src.shape
    ref_matched = reference_encoder(src, pos, layer_params, nhead,
                                    match_kernel_precision=True)
    assert jnp.allclose(out, ref_matched, rtol=5e-3, atol=5e-3), \
        "mismatch vs precision-matched JAX reference"
    ref_f32 = reference_encoder(src, pos, layer_params, nhead,
                                match_kernel_precision=False)
    assert float(jnp.max(jnp.abs(out - ref_f32))) < 0.1, \
        "mismatch vs fp32 JAX reference beyond expected bf16 tolerance"
    return out


if __name__ == "__main__":
    key = jax.random.PRNGKey(0)
    run = jax.jit(transformer_encoder, static_argnums=(3,))

    # --- test 1: divisible sequence (no padding path) -------------------------
    S, B, D = 8, 2, 32          # seq, batch, d_model
    NHEAD, FF, NUM_LAYERS = 4, 64, 2
    k_src, k_pos, k_par, k2 = jax.random.split(key, 4)
    src = jax.random.normal(k_src, (S, B, D), jnp.float32)
    pos = jax.random.normal(k_pos, (S, B, D), jnp.float32)
    layer_params = [init_layer_params(k, D, NHEAD, FF)
                    for k in jax.random.split(k_par, NUM_LAYERS)]
    _check(src, pos, layer_params, NHEAD, run)

    # --- test 2: awkward sequence length (exercises pad + key-mask path) -----
    S2, B2 = 12, 1              # pads to 16, one layer
    k_src2, k_pos2, k_par2 = jax.random.split(k2, 3)
    src2 = jax.random.normal(k_src2, (S2, B2, D), jnp.float32)
    pos2 = jax.random.normal(k_pos2, (S2, B2, D), jnp.float32)
    layer_params2 = [init_layer_params(k_par2, D, NHEAD, FF)]
    _check(src2, pos2, layer_params2, NHEAD, run)

    print("KERNEL_OK")
</pallas_src>

<mosaic_0001>
module attributes {stable_mosaic.version = 11 : i64} {
  func.func @encoder_layer_kernel(%arg0: i32, %arg1: i32, %arg2: memref<1x4x8x8xbf16, #tpu.memory_space<vmem>>, %arg3: memref<1x4x8x8xbf16, #tpu.memory_space<vmem>>, %arg4: memref<1x4x8x8xbf16, #tpu.memory_space<vmem>>, %arg5: memref<1x8x32xf32, #tpu.memory_space<vmem>>, %arg6: memref<32x32xbf16, #tpu.memory_space<vmem>>, %arg7: memref<1x32xf32, #tpu.memory_space<vmem>>, %arg8: memref<1x32xf32, #tpu.memory_space<vmem>>, %arg9: memref<1x32xf32, #tpu.memory_space<vmem>>, %arg10: memref<32x64xbf16, #tpu.memory_space<vmem>>, %arg11: memref<1x64xf32, #tpu.memory_space<vmem>>, %arg12: memref<64x32xbf16, #tpu.memory_space<vmem>>, %arg13: memref<1x32xf32, #tpu.memory_space<vmem>>, %arg14: memref<1x32xf32, #tpu.memory_space<vmem>>, %arg15: memref<1x32xf32, #tpu.memory_space<vmem>>, %arg16: memref<1x8x32xf32, #tpu.memory_space<vmem>>, %arg17: memref<8x32xbf16, #tpu.memory_space<vmem>>) attributes {dimension_semantics = [#tpu.dimension_semantics<parallel>, #tpu.dimension_semantics<parallel>], iteration_bounds = array<i64: 2, 1>, scalar_prefetch = 0 : i64, scratch_operands = 1 : i64, tpu.core_type = #tpu.core_type<tc>, window_params = [{transform_indices = @transform_0, window_bounds = array<i64: 1, 4, 8, 8>}, {transform_indices = @transform_1, window_bounds = array<i64: 1, 4, 8, 8>}, {transform_indices = @transform_2, window_bounds = array<i64: 1, 4, 8, 8>}, {transform_indices = @transform_3, window_bounds = array<i64: 1, 8, 32>}, {pipeline_mode = #tpu.pipeline_mode<synchronous>, transform_indices = @transform_4, window_bounds = array<i64: 32, 32>}, {pipeline_mode = #tpu.pipeline_mode<synchronous>, transform_indices = @transform_5, window_bounds = array<i64: 1, 32>}, {pipeline_mode = #tpu.pipeline_mode<synchronous>, transform_indices = @transform_6, window_bounds = array<i64: 1, 32>}, {pipeline_mode = #tpu.pipeline_mode<synchronous>, transform_indices = @transform_7, window_bounds = array<i64: 1, 32>}, {pipeline_mode = #tpu.pipeline_mode<synchronous>, transform_indices = @transform_8, window_bounds = array<i64: 32, 64>}, {pipeline_mode = #tpu.pipeline_mode<synchronous>, transform_indices = @transform_9, window_bounds = array<i64: 1, 64>}, {pipeline_mode = #tpu.pipeline_mode<synchronous>, transform_indices = @transform_10, window_bounds = array<i64: 64, 32>}, {pipeline_mode = #tpu.pipeline_mode<synchronous>, transform_indices = @transform_11, window_bounds = array<i64: 1, 32>}, {pipeline_mode = #tpu.pipeline_mode<synchronous>, transform_indices = @transform_12, window_bounds = array<i64: 1, 32>}, {pipeline_mode = #tpu.pipeline_mode<synchronous>, transform_indices = @transform_13, window_bounds = array<i64: 1, 32>}, {transform_indices = @transform_14, window_bounds = array<i64: 1, 8, 32>}]} {
    %c0 = arith.constant 0 : index
    %c0_0 = arith.constant 0 : index
    %c0_1 = arith.constant 0 : index
    %c0_2 = arith.constant 0 : index
    %0 = vector.load %arg2[%c0, %c0_0, %c0_1, %c0_2] : memref<1x4x8x8xbf16, #tpu.memory_space<vmem>>, vector<1x1x8x8xbf16>
    %1 = vector.shape_cast %0 : vector<1x1x8x8xbf16> to vector<8x8xbf16>
    %c0_3 = arith.constant 0 : index
    %c0_4 = arith.constant 0 : index
    %c0_5 = arith.constant 0 : index
    %c0_6 = arith.constant 0 : index
    %2 = vector.load %arg3[%c0_3, %c0_4, %c0_5, %c0_6] : memref<1x4x8x8xbf16, #tpu.memory_space<vmem>>, vector<1x1x8x8xbf16>
    %3 = vector.shape_cast %2 : vector<1x1x8x8xbf16> to vector<8x8xbf16>
    %cst = arith.constant dense<0.000000e+00> : vector<8x8xf32>
    %4 = tpu.matmul %1, %3, %cst {dimension_numbers = #tpu.dot_dimension_numbers<[1], [0], [0], [1], [0, 0, 1, 1], [], []>} : vector<8x8xbf16>, vector<8x8xbf16>, vector<8x8xf32> -> vector<8x8xf32>
    %cst_7 = arith.constant dense<0xFF800000> : vector<8xf32>
    %5 = vector.multi_reduction <maximumf>, %4, %cst_7 [1] : vector<8x8xf32> to vector<8xf32>
    %6 = vector.shape_cast %5 : vector<8xf32> to vector<8x1xf32>
    %7 = vector.broadcast %6 : vector<8x1xf32> to vector<8x8xf32>
    %8 = arith.subf %4, %7 : vector<8x8xf32>
    %9 = math.exp %8 : vector<8x8xf32>
    %cst_8 = arith.constant dense<0.000000e+00> : vector<8xf32>
    %10 = vector.multi_reduction <add>, %9, %cst_8 [1] : vector<8x8xf32> to vector<8xf32>
    %11 = vector.shape_cast %10 : vector<8xf32> to vector<8x1xf32>
    %12 = arith.truncf %9 : vector<8x8xf32> to vector<8x8xbf16>
    %c0_9 = arith.constant 0 : index
    %c0_10 = arith.constant 0 : index
    %c0_11 = arith.constant 0 : index
    %c0_12 = arith.constant 0 : index
    %13 = vector.load %arg4[%c0_9, %c0_10, %c0_11, %c0_12] : memref<1x4x8x8xbf16, #tpu.memory_space<vmem>>, vector<1x1x8x8xbf16>
    %14 = vector.shape_cast %13 : vector<1x1x8x8xbf16> to vector<8x8xbf16>
    %cst_13 = arith.constant dense<0.000000e+00> : vector<8x8xf32>
    %15 = tpu.matmul %12, %14, %cst_13 {dimension_numbers = #tpu.dot_dimension_numbers<[1], [0], [0], [1], [0, 0, 1, 1], [], []>} : vector<8x8xbf16>, vector<8x8xbf16>, vector<8x8xf32> -> vector<8x8xf32>
    %16 = tpu.reciprocal %11 {approx = true} : vector<8x1xf32> -> vector<8x1xf32>
    %17 = vector.broadcast %16 : vector<8x1xf32> to vector<8x8xf32>
    %18 = arith.mulf %15, %17 : vector<8x8xf32>
    %19 = arith.truncf %18 : vector<8x8xf32> to vector<8x8xbf16>
    %c0_14 = arith.constant 0 : index
    %c0_15 = arith.constant 0 : index
    %20 = vector.load %arg17[%c0_14, %c0_15] : memref<8x32xbf16, #tpu.memory_space<vmem>>, vector<8x8xbf16>
    tpu.vector_store %arg17[%c0_14, %c0_15], %19 {strides = array<i32>} : memref<8x32xbf16, #tpu.memory_space<vmem>>, vector<8x8xbf16>,
    %c0_16 = arith.constant 0 : index
    %c1 = arith.constant 1 : index
    %c0_17 = arith.constant 0 : index
    %c0_18 = arith.constant 0 : index
    %21 = vector.load %arg2[%c0_16, %c1, %c0_17, %c0_18] : memref<1x4x8x8xbf16, #tpu.memory_space<vmem>>, vector<1x1x8x8xbf16>
    %22 = vector.shape_cast %21 : vector<1x1x8x8xbf16> to vector<8x8xbf16>
    %c0_19 = arith.constant 0 : index
    %c1_20 = arith.constant 1 : index
    %c0_21 = arith.constant 0 : index
    %c0_22 = arith.constant 0 : index
    %23 = vector.load %arg3[%c0_19, %c1_20, %c0_21, %c0_22] : memref<1x4x8x8xbf16, #tpu.memory_space<vmem>>, vector<1x1x8x8xbf16>
    %24 = vector.shape_cast %23 : vector<1x1x8x8xbf16> to vector<8x8xbf16>
    %cst_23 = arith.constant dense<0.000000e+00> : vector<8x8xf32>
    %25 = tpu.matmul %22, %24, %cst_23 {dimension_numbers = #tpu.dot_dimension_numbers<[1], [0], [0], [1], [0, 0, 1, 1], [], []>} : vector<8x8xbf16>, vector<8x8xbf16>, vector<8x8xf32> -> vector<8x8xf32>
    %cst_24 = arith.constant dense<0xFF800000> : vector<8xf32>
    %26 = vector.multi_reduction <maximumf>, %25, %cst_24 [1] : vector<8x8xf32> to vector<8xf32>
    %27 = vector.shape_cast %26 : vector<8xf32> to vector<8x1xf32>
    %28 = vector.broadcast %27 : vector<8x1xf32> to vector<8x8xf32>
    %29 = arith.subf %25, %28 : vector<8x8xf32>
    %30 = math.exp %29 : vector<8x8xf32>
    %cst_25 = arith.constant dense<0.000000e+00> : vector<8xf32>
    %31 = vector.multi_reduction <add>, %30, %cst_25 [1] : vector<8x8xf32> to vector<8xf32>
    %32 = vector.shape_cast %31 : vector<8xf32> to vector<8x1xf32>
    %33 = arith.truncf %30 : vector<8x8xf32> to vector<8x8xbf16>
    %c0_26 = arith.constant 0 : index
    %c1_27 = arith.constant 1 : index
    %c0_28 = arith.constant 0 : index
    %c0_29 = arith.constant 0 : index
    %34 = vector.load %arg4[%c0_26, %c1_27, %c0_28, %c0_29] : memref<1x4x8x8xbf16, #tpu.memory_space<vmem>>, vector<1x1x8x8xbf16>
    %35 = vector.shape_cast %34 : vector<1x1x8x8xbf16> to vector<8x8xbf16>
    %cst_30 = arith.constant dense<0.000000e+00> : vector<8x8xf32>
    %36 = tpu.matmul %33, %35, %cst_30 {dimension_numbers = #tpu.dot_dimension_numbers<[1], [0], [0], [1], [0, 0, 1, 1], [], []>} : vector<8x8xbf16>, vector<8x8xbf16>, vector<8x8xf32> -> vector<8x8xf32>
    %37 = tpu.reciprocal %32 {approx = true} : vector<8x1xf32> -> vector<8x1xf32>
    %38 = vector.broadcast %37 : vector<8x1xf32> to vector<8x8xf32>
    %39 = arith.mulf %36, %38 : vector<8x8xf32>
    %40 = arith.truncf %39 : vector<8x8xf32> to vector<8x8xbf16>
    %c0_31 = arith.constant 0 : index
    %c8 = arith.constant 8 : index
    %41 = vector.load %arg17[%c0_31, %c8] : memref<8x32xbf16, #tpu.memory_space<vmem>>, vector<8x8xbf16>
    tpu.vector_store %arg17[%c0_31, %c8], %40 {strides = array<i32>} : memref<8x32xbf16, #tpu.memory_space<vmem>>, vector<8x8xbf16>,
    %c0_32 = arith.constant 0 : index
    %c2 = arith.constant 2 : index
    %c0_33 = arith.constant 0 : index
    %c0_34 = arith.constant 0 : index
    %42 = vector.load %arg2[%c0_32, %c2, %c0_33, %c0_34] : memref<1x4x8x8xbf16, #tpu.memory_space<vmem>>, vector<1x1x8x8xbf16>
    %43 = vector.shape_cast %42 : vector<1x1x8x8xbf16> to vector<8x8xbf16>
    %c0_35 = arith.constant 0 : index
    %c2_36 = arith.constant 2 : index
    %c0_37 = arith.constant 0 : index
    %c0_38 = arith.constant 0 : index
    %44 = vector.load %arg3[%c0_35, %c2_36, %c0_37, %c0_38] : memref<1x4x8x8xbf16, #tpu.memory_space<vmem>>, vector<1x1x8x8xbf16>
    %45 = vector.shape_cast %44 : vector<1x1x8x8xbf16> to vector<8x8xbf16>
    %cst_39 = arith.constant dense<0.000000e+00> : vector<8x8xf32>
    %46 = tpu.matmul %43, %45, %cst_39 {dimension_numbers = #tpu.dot_dimension_numbers<[1], [0], [0], [1], [0, 0, 1, 1], [], []>} : vector<8x8xbf16>, vector<8x8xbf16>, vector<8x8xf32> -> vector<8x8xf32>
    %cst_40 = arith.constant dense<0xFF800000> : vector<8xf32>
    %47 = vector.multi_reduction <maximumf>, %46, %cst_40 [1] : vector<8x8xf32> to vector<8xf32>
    %48 = vector.shape_cast %47 : vector<8xf32> to vector<8x1xf32>
    %49 = vector.broadcast %48 : vector<8x1xf32> to vector<8x8xf32>
    %50 = arith.subf %46, %49 : vector<8x8xf32>
    %51 = math.exp %50 : vector<8x8xf32>
    %cst_41 = arith.constant dense<0.000000e+00> : vector<8xf32>
    %52 = vector.multi_reduction <add>, %51, %cst_41 [1] : vector<8x8xf32> to vector<8xf32>
    %53 = vector.shape_cast %52 : vector<8xf32> to vector<8x1xf32>
    %54 = arith.truncf %51 : vector<8x8xf32> to vector<8x8xbf16>
    %c0_42 = arith.constant 0 : index
    %c2_43 = arith.constant 2 : index
    %c0_44 = arith.constant 0 : index
    %c0_45 = arith.constant 0 : index
    %55 = vector.load %arg4[%c0_42, %c2_43, %c0_44, %c0_45] : memref<1x4x8x8xbf16, #tpu.memory_space<vmem>>, vector<1x1x8x8xbf16>
    %56 = vector.shape_cast %55 : vector<1x1x8x8xbf16> to vector<8x8xbf16>
    %cst_46 = arith.constant dense<0.000000e+00> : vector<8x8xf32>
    %57 = tpu.matmul %54, %56, %cst_46 {dimension_numbers = #tpu.dot_dimension_numbers<[1], [0], [0], [1], [0, 0, 1, 1], [], []>} : vector<8x8xbf16>, vector<8x8xbf16>, vector<8x8xf32> -> vector<8x8xf32>
    %58 = tpu.reciprocal %53 {approx = true} : vector<8x1xf32> -> vector<8x1xf32>
    %59 = vector.broadcast %58 : vector<8x1xf32> to vector<8x8xf32>
    %60 = arith.mulf %57, %59 : vector<8x8xf32>
    %61 = arith.truncf %60 : vector<8x8xf32> to vector<8x8xbf16>
    %c0_47 = arith.constant 0 : index
    %c16 = arith.constant 16 : index
    %62 = vector.load %arg17[%c0_47, %c16] : memref<8x32xbf16, #tpu.memory_space<vmem>>, vector<8x8xbf16>
    tpu.vector_store %arg17[%c0_47, %c16], %61 {strides = array<i32>} : memref<8x32xbf16, #tpu.memory_space<vmem>>, vector<8x8xbf16>,
    %c0_48 = arith.constant 0 : index
    %c3 = arith.constant 3 : index
    %c0_49 = arith.constant 0 : index
    %c0_50 = arith.constant 0 : index
    %63 = vector.load %arg2[%c0_48, %c3, %c0_49, %c0_50] : memref<1x4x8x8xbf16, #tpu.memory_space<vmem>>, vector<1x1x8x8xbf16>
    %64 = vector.shape_cast %63 : vector<1x1x8x8xbf16> to vector<8x8xbf16>
    %c0_51 = arith.constant 0 : index
    %c3_52 = arith.constant 3 : index
    %c0_53 = arith.constant 0 : index
    %c0_54 = arith.constant 0 : index
    %65 = vector.load %arg3[%c0_51, %c3_52, %c0_53, %c0_54] : memref<1x4x8x8xbf16, #tpu.memory_space<vmem>>, vector<1x1x8x8xbf16>
    %66 = vector.shape_cast %65 : vector<1x1x8x8xbf16> to vector<8x8xbf16>
    %cst_55 = arith.constant dense<0.000000e+00> : vector<8x8xf32>
    %67 = tpu.matmul %64, %66, %cst_55 {dimension_numbers = #tpu.dot_dimension_numbers<[1], [0], [0], [1], [0, 0, 1, 1], [], []>} : vector<8x8xbf16>, vector<8x8xbf16>, vector<8x8xf32> -> vector<8x8xf32>
    %cst_56 = arith.constant dense<0xFF800000> : vector<8xf32>
    %68 = vector.multi_reduction <maximumf>, %67, %cst_56 [1] : vector<8x8xf32> to vector<8xf32>
    %69 = vector.shape_cast %68 : vector<8xf32> to vector<8x1xf32>
    %70 = vector.broadcast %69 : vector<8x1xf32> to vector<8x8xf32>
    %71 = arith.subf %67, %70 : vector<8x8xf32>
    %72 = math.exp %71 : vector<8x8xf32>
    %cst_57 = arith.constant dense<0.000000e+00> : vector<8xf32>
    %73 = vector.multi_reduction <add>, %72, %cst_57 [1] : vector<8x8xf32> to vector<8xf32>
    %74 = vector.shape_cast %73 : vector<8xf32> to vector<8x1xf32>
    %75 = arith.truncf %72 : vector<8x8xf32> to vector<8x8xbf16>
    %c0_58 = arith.constant 0 : index
    %c3_59 = arith.constant 3 : index
    %c0_60 = arith.constant 0 : index
    %c0_61 = arith.constant 0 : index
    %76 = vector.load %arg4[%c0_58, %c3_59, %c0_60, %c0_61] : memref<1x4x8x8xbf16, #tpu.memory_space<vmem>>, vector<1x1x8x8xbf16>
    %77 = vector.shape_cast %76 : vector<1x1x8x8xbf16> to vector<8x8xbf16>
    %cst_62 = arith.constant dense<0.000000e+00> : vector<8x8xf32>
    %78 = tpu.matmul %75, %77, %cst_62 {dimension_numbers = #tpu.dot_dimension_numbers<[1], [0], [0], [1], [0, 0, 1, 1], [], []>} : vector<8x8xbf16>, vector<8x8xbf16>, vector<8x8xf32> -> vector<8x8xf32>
    %79 = tpu.reciprocal %74 {approx = true} : vector<8x1xf32> -> vector<8x1xf32>
    %80 = vector.broadcast %79 : vector<8x1xf32> to vector<8x8xf32>
    %81 = arith.mulf %78, %80 : vector<8x8xf32>
    %82 = arith.truncf %81 : vector<8x8xf32> to vector<8x8xbf16>
    %c0_63 = arith.constant 0 : index
    %c24 = arith.constant 24 : index
    %83 = vector.load %arg17[%c0_63, %c24] : memref<8x32xbf16, #tpu.memory_space<vmem>>, vector<8x8xbf16>
    tpu.vector_store %arg17[%c0_63, %c24], %82 {strides = array<i32>} : memref<8x32xbf16, #tpu.memory_space<vmem>>, vector<8x8xbf16>,
    %c0_64 = arith.constant 0 : index
    %c0_65 = arith.constant 0 : index
    %84 = vector.load %arg17[%c0_64, %c0_65] : memref<8x32xbf16, #tpu.memory_space<vmem>>, vector<8x32xbf16>
    %c0_66 = arith.constant 0 : index
    %c0_67 = arith.constant 0 : index
    %85 = vector.load %arg6[%c0_66, %c0_67] : memref<32x32xbf16, #tpu.memory_space<vmem>>, vector<32x32xbf16>
    %cst_68 = arith.constant dense<0.000000e+00> : vector<8x32xf32>
    %86 = tpu.matmul %84, %85, %cst_68 {dimension_numbers = #tpu.dot_dimension_numbers<[1], [0], [0], [1], [0, 0, 1, 1], [], []>} : vector<8x32xbf16>, vector<32x32xbf16>, vector<8x32xf32> -> vector<8x32xf32>
    %c0_69 = arith.constant 0 : index
    %c0_70 = arith.constant 0 : index
    %87 = vector.load %arg7[%c0_69, %c0_70] : memref<1x32xf32, #tpu.memory_space<vmem>>, vector<1x32xf32>
    %88 = vector.broadcast %87 : vector<1x32xf32> to vector<8x32xf32>
    %89 = arith.addf %86, %88 : vector<8x32xf32>
    %c0_71 = arith.constant 0 : index
    %c0_72 = arith.constant 0 : index
    %c0_73 = arith.constant 0 : index
    %90 = vector.load %arg5[%c0_71, %c0_72, %c0_73] : memref<1x8x32xf32, #tpu.memory_space<vmem>>, vector<1x8x32xf32>
    %91 = vector.shape_cast %90 : vector<1x8x32xf32> to vector<8x32xf32>
    %92 = arith.addf %91, %89 : vector<8x32xf32>
    %c0_74 = arith.constant 0 : index
    %c0_75 = arith.constant 0 : index
    %93 = vector.load %arg8[%c0_74, %c0_75] : memref<1x32xf32, #tpu.memory_space<vmem>>, vector<1x32xf32>
    %c0_76 = arith.constant 0 : index
    %c0_77 = arith.constant 0 : index
    %94 = vector.load %arg9[%c0_76, %c0_77] : memref<1x32xf32, #tpu.memory_space<vmem>>, vector<1x32xf32>
    %cst_78 = arith.constant dense<0.000000e+00> : vector<8xf32>
    %95 = vector.multi_reduction <add>, %92, %cst_78 [1] : vector<8x32xf32> to vector<8xf32>
    %96 = vector.shape_cast %95 : vector<8xf32> to vector<8x1xf32>
    %cst_79 = arith.constant 3.200000e+01 : f32
    %97 = vector.broadcast %cst_79 : f32 to vector<8x1xf32>
    %98 = arith.divf %96, %97 : vector<8x1xf32>
    %99 = vector.broadcast %98 : vector<8x1xf32> to vector<8x32xf32>
    %100 = arith.subf %92, %99 : vector<8x32xf32>
    %101 = arith.mulf %100, %100 : vector<8x32xf32>
    %cst_80 = arith.constant dense<0.000000e+00> : vector<8xf32>
    %102 = vector.multi_reduction <add>, %101, %cst_80 [1] : vector<8x32xf32> to vector<8xf32>
    %103 = vector.shape_cast %102 : vector<8xf32> to vector<8x1xf32>
    %cst_81 = arith.constant 3.200000e+01 : f32
    %104 = vector.broadcast %cst_81 : f32 to vector<8x1xf32>
    %105 = arith.divf %103, %104 : vector<8x1xf32>
    %106 = vector.broadcast %98 : vector<8x1xf32> to vector<8x32xf32>
    %107 = arith.subf %92, %106 : vector<8x32xf32>
    %cst_82 = arith.constant 9.99999974E-6 : f32
    %108 = vector.broadcast %cst_82 : f32 to vector<8x1xf32>
    %109 = arith.addf %105, %108 : vector<8x1xf32>
    %110 = math.rsqrt %109 : vector<8x1xf32>
    %111 = vector.broadcast %110 : vector<8x1xf32> to vector<8x32xf32>
    %112 = arith.mulf %107, %111 : vector<8x32xf32>
    %113 = vector.broadcast %93 : vector<1x32xf32> to vector<8x32xf32>
    %114 = arith.mulf %112, %113 : vector<8x32xf32>
    %115 = vector.broadcast %94 : vector<1x32xf32> to vector<8x32xf32>
    %116 = arith.addf %114, %115 : vector<8x32xf32>
    %117 = arith.truncf %116 : vector<8x32xf32> to vector<8x32xbf16>
    %c0_83 = arith.constant 0 : index
    %c0_84 = arith.constant 0 : index
    %118 = vector.load %arg10[%c0_83, %c0_84] : memref<32x64xbf16, #tpu.memory_space<vmem>>, vector<32x64xbf16>
    %cst_85 = arith.constant dense<0.000000e+00> : vector<8x64xf32>
    %119 = tpu.matmul %117, %118, %cst_85 {dimension_numbers = #tpu.dot_dimension_numbers<[1], [0], [0], [1], [0, 0, 1, 1], [], []>} : vector<8x32xbf16>, vector<32x64xbf16>, vector<8x64xf32> -> vector<8x64xf32>
    %c0_86 = arith.constant 0 : index
    %c0_87 = arith.constant 0 : index
    %120 = vector.load %arg11[%c0_86, %c0_87] : memref<1x64xf32, #tpu.memory_space<vmem>>, vector<1x64xf32>
    %121 = vector.broadcast %120 : vector<1x64xf32> to vector<8x64xf32>
    %122 = arith.addf %119, %121 : vector<8x64xf32>
    %cst_88 = arith.constant 0.000000e+00 : f32
    %123 = vector.broadcast %cst_88 : f32 to vector<8x64xf32>
    %124 = arith.maximumf %122, %123 : vector<8x64xf32>
    %125 = arith.truncf %124 : vector<8x64xf32> to vector<8x64xbf16>
    %c0_89 = arith.constant 0 : index
    %c0_90 = arith.constant 0 : index
    %126 = vector.load %arg12[%c0_89, %c0_90] : memref<64x32xbf16, #tpu.memory_space<vmem>>, vector<64x32xbf16>
    %cst_91 = arith.constant dense<0.000000e+00> : vector<8x32xf32>
    %127 = tpu.matmul %125, %126, %cst_91 {dimension_numbers = #tpu.dot_dimension_numbers<[1], [0], [0], [1], [0, 0, 1, 1], [], []>} : vector<8x64xbf16>, vector<64x32xbf16>, vector<8x32xf32> -> vector<8x32xf32>
    %c0_92 = arith.constant 0 : index
    %c0_93 = arith.constant 0 : index
    %128 = vector.load %arg13[%c0_92, %c0_93] : memref<1x32xf32, #tpu.memory_space<vmem>>, vector<1x32xf32>
    %129 = vector.broadcast %128 : vector<1x32xf32> to vector<8x32xf32>
    %130 = arith.addf %127, %129 : vector<8x32xf32>
    %131 = arith.addf %116, %130 : vector<8x32xf32>
    %c0_94 = arith.constant 0 : index
    %c0_95 = arith.constant 0 : index
    %132 = vector.load %arg14[%c0_94, %c0_95] : memref<1x32xf32, #tpu.memory_space<vmem>>, vector<1x32xf32>
    %c0_96 = arith.constant 0 : index
    %c0_97 = arith.constant 0 : index
    %133 = vector.load %arg15[%c0_96, %c0_97] : memref<1x32xf32, #tpu.memory_space<vmem>>, vector<1x32xf32>
    %cst_98 = arith.constant dense<0.000000e+00> : vector<8xf32>
    %134 = vector.multi_reduction <add>, %131, %cst_98 [1] : vector<8x32xf32> to vector<8xf32>
    %135 = vector.shape_cast %134 : vector<8xf32> to vector<8x1xf32>
    %cst_99 = arith.constant 3.200000e+01 : f32
    %136 = vector.broadcast %cst_99 : f32 to vector<8x1xf32>
    %137 = arith.divf %135, %136 : vector<8x1xf32>
    %138 = vector.broadcast %137 : vector<8x1xf32> to vector<8x32xf32>
    %139 = arith.subf %131, %138 : vector<8x32xf32>
    %140 = arith.mulf %139, %139 : vector<8x32xf32>
    %cst_100 = arith.constant dense<0.000000e+00> : vector<8xf32>
    %141 = vector.multi_reduction <add>, %140, %cst_100 [1] : vector<8x32xf32> to vector<8xf32>
    %142 = vector.shape_cast %141 : vector<8xf32> to vector<8x1xf32>
    %cst_101 = arith.constant 3.200000e+01 : f32
    %143 = vector.broadcast %cst_101 : f32 to vector<8x1xf32>
    %144 = arith.divf %142, %143 : vector<8x1xf32>
    %145 = vector.broadcast %137 : vector<8x1xf32> to vector<8x32xf32>
    %146 = arith.subf %131, %145 : vector<8x32xf32>
    %cst_102 = arith.constant 9.99999974E-6 : f32
    %147 = vector.broadcast %cst_102 : f32 to vector<8x1xf32>
    %148 = arith.addf %144, %147 : vector<8x1xf32>
    %149 = math.rsqrt %148 : vector<8x1xf32>
    %150 = vector.broadcast %149 : vector<8x1xf32> to vector<8x32xf32>
    %151 = arith.mulf %146, %150 : vector<8x32xf32>
    %152 = vector.broadcast %132 : vector<1x32xf32> to vector<8x32xf32>
    %153 = arith.mulf %151, %152 : vector<8x32xf32>
    %154 = vector.broadcast %133 : vector<1x32xf32> to vector<8x32xf32>
    %155 = arith.addf %153, %154 : vector<8x32xf32>
    %c0_103 = arith.constant 0 : index
    %c0_104 = arith.constant 0 : index
    %c0_105 = arith.constant 0 : index
    %156 = vector.load %arg16[%c0_103, %c0_104, %c0_105] : memref<1x8x32xf32, #tpu.memory_space<vmem>>, vector<1x8x32xf32>
    %157 = vector.shape_cast %156 : vector<1x8x32xf32> to vector<8x32xf32>
    %158 = vector.shape_cast %155 : vector<8x32xf32> to vector<1x8x32xf32>
    tpu.vector_store %arg16[%c0_103, %c0_104, %c0_105], %158 {strides = array<i32>} : memref<1x8x32xf32, #tpu.memory_space<vmem>>, vector<1x8x32xf32>,
    return
  }
  func.func @transform_0(%arg0: i32, %arg1: i32) -> (i32, i32, i32, i32) {
    %c0_i32 = arith.constant 0 : i32
    %c0_i32_0 = arith.constant 0 : i32
    %c0_i32_1 = arith.constant 0 : i32
    return %arg0, %c0_i32, %arg1, %c0_i32_0 : i32, i32, i32, i32
  }
  func.func @transform_1(%arg0: i32, %arg1: i32) -> (i32, i32, i32, i32) {
    %c0_i32 = arith.constant 0 : i32
    %c0_i32_0 = arith.constant 0 : i32
    %c0_i32_1 = arith.constant 0 : i32
    %c0_i32_2 = arith.constant 0 : i32
    return %arg0, %c0_i32, %c0_i32_0, %c0_i32_1 : i32, i32, i32, i32
  }
  func.func @transform_2(%arg0: i32, %arg1: i32) -> (i32, i32, i32, i32) {
    %c0_i32 = arith.constant 0 : i32
    %c0_i32_0 = arith.constant 0 : i32
    %c0_i32_1 = arith.constant 0 : i32
    %c0_i32_2 = arith.constant 0 : i32
    return %arg0, %c0_i32, %c0_i32_0, %c0_i32_1 : i32, i32, i32, i32
  }
  func.func @transform_3(%arg0: i32, %arg1: i32) -> (i32, i32, i32) {
    %c0_i32 = arith.constant 0 : i32
    %c0_i32_0 = arith.constant 0 : i32
    return %arg0, %arg1, %c0_i32 : i32, i32, i32
  }
  func.func @transform_4(%arg0: i32, %arg1: i32) -> (i32, i32) {
    %c0_i32 = arith.constant 0 : i32
    %c0_i32_0 = arith.constant 0 : i32
    %c0_i32_1 = arith.constant 0 : i32
    return %c0_i32, %c0_i32_0 : i32, i32
  }
  func.func @transform_5(%arg0: i32, %arg1: i32) -> (i32, i32) {
    %c0_i32 = arith.constant 0 : i32
    %c0_i32_0 = arith.constant 0 : i32
    %c0_i32_1 = arith.constant 0 : i32
    return %c0_i32, %c0_i32_0 : i32, i32
  }
  func.func @transform_6(%arg0: i32, %arg1: i32) -> (i32, i32) {
    %c0_i32 = arith.constant 0 : i32
    %c0_i32_0 = arith.constant 0 : i32
    %c0_i32_1 = arith.constant 0 : i32
    return %c0_i32, %c0_i32_0 : i32, i32
  }
  func.func @transform_7(%arg0: i32, %arg1: i32) -> (i32, i32) {
    %c0_i32 = arith.constant 0 : i32
    %c0_i32_0 = arith.constant 0 : i32
    %c0_i32_1 = arith.constant 0 : i32
    return %c0_i32, %c0_i32_0 : i32, i32
  }
  func.func @transform_8(%arg0: i32, %arg1: i32) -> (i32, i32) {
    %c0_i32 = arith.constant 0 : i32
    %c0_i32_0 = arith.constant 0 : i32
    %c0_i32_1 = arith.constant 0 : i32
    return %c0_i32, %c0_i32_0 : i32, i32
  }
  func.func @transform_9(%arg0: i32, %arg1: i32) -> (i32, i32) {
    %c0_i32 = arith.constant 0 : i32
    %c0_i32_0 = arith.constant 0 : i32
    %c0_i32_1 = arith.constant 0 : i32
    return %c0_i32, %c0_i32_0 : i32, i32
  }
  func.func @transform_10(%arg0: i32, %arg1: i32) -> (i32, i32) {
    %c0_i32 = arith.constant 0 : i32
    %c0_i32_0 = arith.constant 0 : i32
    %c0_i32_1 = arith.constant 0 : i32
    return %c0_i32, %c0_i32_0 : i32, i32
  }
  func.func @transform_11(%arg0: i32, %arg1: i32) -> (i32, i32) {
    %c0_i32 = arith.constant 0 : i32
    %c0_i32_0 = arith.constant 0 : i32
    %c0_i32_1 = arith.constant 0 : i32
    return %c0_i32, %c0_i32_0 : i32, i32
  }
  func.func @transform_12(%arg0: i32, %arg1: i32) -> (i32, i32) {
    %c0_i32 = arith.constant 0 : i32
    %c0_i32_0 = arith.constant 0 : i32
    %c0_i32_1 = arith.constant 0 : i32
    return %c0_i32, %c0_i32_0 : i32, i32
  }
  func.func @transform_13(%arg0: i32, %arg1: i32) -> (i32, i32) {
    %c0_i32 = arith.constant 0 : i32
    %c0_i32_0 = arith.constant 0 : i32
    %c0_i32_1 = arith.constant 0 : i32
    return %c0_i32, %c0_i32_0 : i32, i32
  }
  func.func @transform_14(%arg0: i32, %arg1: i32) -> (i32, i32, i32) {
    %c0_i32 = arith.constant 0 : i32
    %c0_i32_0 = arith.constant 0 : i32
    return %arg0, %arg1, %c0_i32 : i32, i32, i32
  }
}

</mosaic_0001>

<bundles_post_ra>
// kernel: transformer_encoder.2
= control target key start
LH: loop header
LB: loop body
LE: loop exit
PB: predicated region body
PF: predicated region fallthrough
CT: control target
= control target key end

     0   :  { %s1372_s29 = smov 0   ;;  %s1374_s30 = smov 0   ;;  %s1503_s0 = inlined_call_operand.vmem [shape: bf16[2,4,8,8], index: 0, kind: input, shape index: {}]   ;;  %s1504_s1 = inlined_call_operand.vmem [shape: bf16[2,4,8,8], index: 1, kind: input, shape index: {}]   ;;  %s1505_s2 = inlined_call_operand.vmem [shape: bf16[2,4,8,8], index: 2, kind: input, shape index: {}]   ;;  %s1506_s3 = inlined_call_operand.vmem [shape: f32[2,8,32], index: 3, kind: input, shape index: {}]   ;;  %s1507_s4 = inlined_call_operand.vmem [shape: bf16[32,32], index: 4, kind: input, shape index: {}]   ;;  %s1508_s5 = inlined_call_operand.vmem [shape: f32[1,32], index: 5, kind: input, shape index: {}]   ;;  %s1509_s6 = inlined_call_operand.vmem [shape: f32[1,32], index: 6, kind: input, shape index: {}]   ;;  %s1510_s7 = inlined_call_operand.vmem [shape: f32[1,32], index: 7, kind: input, shape index: {}]   ;;  %s1511_s8 = inlined_call_operand.vmem [shape: bf16[32,64], index: 8, kind: input, shape index: {}]   ;;  %s1512_s9 = inlined_call_operand.vmem [shape: f32[1,64], index: 9, kind: input, shape index: {}]   ;;  %s1513_s10 = inlined_call_operand.vmem [shape: bf16[64,32], index: 10, kind: input, shape index: {}]   ;;  %s1514_s11 = inlined_call_operand.vmem [shape: f32[1,32], index: 11, kind: input, shape index: {}]   ;;  %s1515_s12 = inlined_call_operand.vmem [shape: f32[1,32], index: 12, kind: input, shape index: {}]   ;;  %s1516_s13 = inlined_call_operand.vmem [shape: f32[1,32], index: 13, kind: input, shape index: {}]   ;;  %s1517_s14 = inlined_call_operand.vmem [shape: f32[2,8,32], index: 14, kind: output, shape index: {}]  }
   0x1   :  { %s1376_s15 = smov 0  }
   0x2 LB: > { %s36_s16 = sadd.s32 1, %s1287_s30  ;;  %p1138_p0 = scmp.ge.s32.totalorder %s1291_s15, 1  ;;  %s1291_s15 = sphi %s1376_s15, %s24_s15   ;;  %s1287_s30 = sphi %s1374_s30, %s1519_s30   ;;  %s1283_s29 = sphi %s1372_s29, %s1518_s29  }
   0x3   : > { %p38_p1 = scmp.ge.s32.totalorder %s36_s16, 2  ;;  %p465_p2 = scmp.lt.s32.totalorder %s1291_s15, 3 }
   0x5   : > { %s1521_s16 = smov (%p38_p1, %s36_s16), 0  ;;  %p466_p3 = pnand %p1138_p0, %p465_p2 }
   0x6   : > { %p533_p4 = scmp.lt.s32.totalorder (!%p466_p3), %s1283_s29, 1  ;;  %s1293_s27 = smov (!%p466_p3), 8  }
   0x7   : > { %469 = sbr.rel (%p466_p3) target bundleno = 1497 (0x5d9), region = 76  ;;  %s1294_s28 = smov (!%p466_p3), 24  }
   0xc   : > { %s1523_s29 = smov (!%p533_p4, %s1283_s29), 1  ;;  %vm572_vm0 = vcmask 1043456   ;;  %vm568_vm1 = vcmask 64512   ;;  %vm622_vm2 = vcmask 60416   ;;  %vm685_vm3 = vcmask 126016  }
   0xd   : > { %s1393_s17 = sshll.u32 %s1523_s29, 4  ;;  %vm748_vm4 = vcmask 191616   ;;  %vm811_vm5 = vcmask 257216   ;;  %vm834_vm6 = vcmask 261120   ;;  %s1145_s22 = sshll.u32 %s1523_s29, 3  ;;  %vm967_vm11 = vcmask 523264  }
   0xe   : > { %s545_s20 = scalar_lea.vmem %s1504_s1, %s1393_s17  ;;  %s540_s23 = scalar_lea.vmem %s1503_s0, %s1393_s17 }
   0xf   : > { %v1150_v0 = vld [vmem:[%s545_s20 + $0x4] sm:$0xf]  ;;  %v1160_v1 = vld [vmem:[%s545_s20 + $0xc] sm:$0xf]  ;;  %v567_v4 = vld [vmem:[%s545_s20] sm:$0xf]  ;;  %s550_s26 = scalar_lea.vmem %s1505_s2, %s1393_s17 }
  0x10   : > { %v632_v2 = vsel %vm572_vm0, %v1150_v0, 0  ;;  %v758_v3 = vsel %vm572_vm0, %v1160_v1, 0  ;;  %v1149_v5 = vld [vmem:[%s540_s23 + $0x4] sm:$0xf]  ;;  %v574_v6 = vsel %vm572_vm0, %v567_v4, 0  ;;  %s1295_s17 = smov 16  }
  0x11   : > { %641 = vmatpush.bf16.msra.mxu2 %v632_v2  ;;  %v1155_v7 = vld [vmem:[%s545_s20 + $0x8] sm:$0xf]  ;;  %583 = vmatpush.bf16.msra.mxu0 %v574_v6  ;;  %v566_v8 = vld [vmem:[%s540_s23] sm:$0xf]  ;;  %v1159_v10 = vld [vmem:[%s540_s23 + $0xc] sm:$0xf]  ;;  %s564_s20 = scalar_lea.vmem %s1517_s14, %s1145_s22 }
  0x12   : > { %v695_v9 = vsel %vm572_vm0, %v1155_v7, 0  ;;  %v1154_v11 = vld [vmem:[%s540_s23 + $0x8] sm:$0xf]  ;;  %v1152_v24 = vld [vmem:[%s550_s26 + $0x4] sm:$0xf] }
  0x13   : > { %v663_v25 = vsel %vm572_vm0, %v1152_v24, 0  ;;  %v599_v26 = vld [vmem:[%s550_s26] sm:$0xf]  ;;  %v1162_v28 = vld [vmem:[%s550_s26 + $0xc] sm:$0xf] }
  0x14   : > { %1151 = vmatmul.msk.bf16.vlgmr.msra.gmra.mxu2 %vm568_vm1, %v1149_v5  ;;  %1147 = vmatmul.msk.bf16.vlgmr.msra.gmra.mxu0 %vm568_vm1, %v566_v8  ;;  %v604_v27 = vsel %vm572_vm0, %v599_v26, 0  ;;  %v789_v29 = vsel %vm572_vm0, %v1162_v28, 0  ;;  %v1157_v30 = vld [vmem:[%s550_s26 + $0x8] sm:$0xf] }
  0x15   : > { %767 = vmatpush.bf16.msrb.mxu2 %v758_v3  ;;  %704 = vmatpush.bf16.msrb.mxu0 %v695_v9  ;;  %v726_v31 = vsel %vm572_vm0, %v1157_v30, 0 }
  0x16   : > { %672 = vmatpush.bf16.msra.mxu3 %v663_v25  ;;  %613 = vmatpush.bf16.msra.mxu1 %v604_v27 }
  0x1a   : > { %798 = vmatpush.bf16.msrb.mxu3 %v789_v29  ;;  %735 = vmatpush.bf16.msrb.mxu1 %v726_v31  ;;  %v1296_v29 = vmov 32.0  }
  0x24   : > { %1161 = vmatmul.msk.bf16.vlgmr.msrb.gmra.mxu2 %vm568_vm1, %v1159_v10  ;;  %1156 = vmatmul.msk.bf16.vlgmr.msrb.gmra.mxu0 %vm568_vm1, %v1154_v11 }
  0x91   : > { %v585_v12 = vpop.f32.mrf.mxu0 }
  0x92   : > { %v589_v16 = vsel %vm568_vm1, %v585_v12, -inf }
  0x97   : > { %v643_v13 = vpop.f32.mrf.mxu2 }
  0x98   : > { %v647_v14 = vsel %vm568_vm1, %v643_v13, -inf }
  0x99   : > { %648 = vmax.xlane.f32.xlu0 %v647_v14  ;;  %v587_v15 = vpop.f32.mrf.mxu0 }
  0x9f   : > { %v645_v17 = vpop.f32.mrf.mxu2 }
  0xa1   : > { %590 = vmax.xlane.f32.xlu0 %v589_v16  ;;  %v706_v18 = vpop.f32.mrf.mxu0  ;;  %v1205_v16 = vld [vmem:[%s1507_s4 + $0x8] sm:$0xff] }
  0xa2   : > { %v710_v22 = vsel %vm568_vm1, %v706_v18, -inf  ;;  %844 = vmatpush.bf16.msra.mxu0 %v1205_v16 }
  0xa7   : > { %v769_v19 = vpop.f32.mrf.mxu2 }
  0xa8   : > { %v773_v20 = vsel %vm568_vm1, %v769_v19, -inf }
  0xa9   : > { %774 = vmax.xlane.f32.xlu1 %v773_v20  ;;  %v708_v21 = vpop.f32.mrf.mxu0 }
  0xaf   : > { %v771_v23 = vpop.f32.mrf.mxu2 }
  0xb1   : > { %711 = vmax.xlane.f32.xlu1 %v710_v22  ;;  %v1240_v22 = vld [vmem:[%s1508_s5] ss:$0 sm:$0xff] }
 0x10c   : > { %v649_v32 = vpop.xlane.xlu0 %648 }
 0x10d   : > { %v650_v33 = vsub.f32 %v643_v13, %v649_v32 }
 0x10f   : > { %v651_v34 = vmul.f32 1.442695, %v650_v33 }
 0x111   : > { %1247 = vpow2.f32 %v651_v34 }
 0x114   : > { %v591_v35 = vpop.xlane.xlu0 %590 }
 0x115   : > { %v592_v36 = vsub.f32 %v585_v12, %v591_v35 }
 0x117   : > { %v1248_v37 = vpop.eup %1247  ;;  %v593_v38 = vmul.f32 1.442695, %v592_v36 }
 0x118   : > { %v653_v39 = vsel %vm568_vm1, %v1248_v37, 0.0  ;;  %v656_v40 = vpack.c.bf16 %v1248_v37, %v1248_v37 }
 0x119   : > { %1249 = vpow2.f32 %v593_v38  ;;  %654 = vadd.xlane.f32.xlu2 %v653_v39 }
 0x11a   : > { %1153 = vmatmul.msk.bf16.vlgmr.msra.gmra.mxu3 %vm568_vm1, %v656_v40 }
 0x11c   : > { %v775_v41 = vpop.xlane.xlu1 %774 }
 0x11d   : > { %v776_v42 = vsub.f32 %v769_v19, %v775_v41  ;;  %v1207_v41 = vld [vmem:[%s1511_s8 + $0x8] sm:$0xff] }
 0x11f   : > { %v1250_v43 = vpop.eup %1249  ;;  %v777_v44 = vmul.f32 1.442695, %v776_v42  ;;  %v1206_v42 = vld [vmem:[%s1511_s8] sm:$0xff] }
 0x120   : > { %v595_v45 = vsel %vm568_vm1, %v1250_v43, 0.0  ;;  %v598_v46 = vpack.c.bf16 %v1250_v43, %v1250_v43  ;;  %v1211_v43 = vld [vmem:[%s1513_s10 + $0x18] sm:$0xff] }
 0x121   : > { %1251 = vpow2.f32 %v777_v44  ;;  %596 = vadd.xlane.f32.xlu1 %v595_v45  ;;  %975 = vmatpush.bf16.msra.mxu2 %v1211_v43 }
 0x122   : > { %1148 = vmatmul.msk.bf16.vlgmr.msra.gmra.mxu1 %vm568_vm1, %v598_v46  ;;  %v1210_v46 = vld [vmem:[%s1513_s10 + $0x10] sm:$0xff] }
 0x123   : > { %922 = vmatpush.bf16.msra.mxu1 %v1207_v41 }
 0x124   : > { %v712_v47 = vpop.xlane.xlu1 %711 }
 0x125   : > { %v713_v48 = vsub.f32 %v706_v18, %v712_v47  ;;  %v1204_v18 = vld [vmem:[%s1507_s4] sm:$0xff]  ;;  %976 = vmatpush.bf16.msra.mxu2 %v1210_v46 }
 0x126   : > { %845 = vmatpush.bf16.msra.mxu0 %v1204_v18 }
 0x127   : > { %v1252_v49 = vpop.eup %1251  ;;  %v714_v50 = vmul.f32 1.442695, %v713_v48  ;;  %923 = vmatpush.bf16.msra.mxu1 %v1206_v42  ;;  %v1209_v48 = vld [vmem:[%s1513_s10 + $0x8] sm:$0xff] }
 0x128   : > { %v779_v51 = vsel %vm568_vm1, %v1252_v49, 0.0  ;;  %v782_v52 = vpack.c.bf16 %v1252_v49, %v1252_v49 }
 0x129   : > { %1253 = vpow2.f32 %v714_v50  ;;  %780 = vadd.xlane.f32.xlu0 %v779_v51  ;;  %977 = vmatpush.bf16.msra.mxu2 %v1209_v48 }
 0x12a   : > { %1163 = vmatmul.msk.bf16.vlgmr.msrb.gmra.mxu3 %vm568_vm1, %v782_v52 }
 0x12f   : > { %v1254_v53 = vpop.eup %1253 }
 0x130   : > { %v716_v54 = vsel %vm568_vm1, %v1254_v53, 0.0  ;;  %v719_v55 = vpack.c.bf16 %v1254_v53, %v1254_v53 }
 0x131   : > { %717 = vadd.xlane.f32.xlu2 %v716_v54 }
 0x132   : > { %1158 = vmatmul.msk.bf16.vlgmr.msrb.gmra.mxu1 %vm568_vm1, %v719_v55  ;;  %v1241_v55 = vld [vmem:[%s1509_s6] ss:$0 sm:$0xff] }
 0x18c   : > { %v655_v56 = vpop.xlane.xlu2 %654 }
 0x18d   : > { %1255 = vrcp.f32 %v655_v56 }
 0x193   : > { %v1256_v58 = vpop.eup %1255 }
 0x194   : > { %v597_v57 = vpop.xlane.xlu1 %596 }
 0x195   : > { %1257 = vrcp.f32 %v597_v57  ;;  %v1242_v57 = vld [vmem:[%s1510_s7] ss:$0 sm:$0xff] }
 0x19b   : > { %v1258_v61 = vpop.eup %1257 }
 0x19c   : > { %v781_v2 = vpop.xlane.xlu0 %780 }
 0x19d   : > { %v674_v59 = vpop.f32.mrf.mxu3  ;;  %1259 = vrcp.f32 %v781_v2 }
 0x19e   : > { %v679_v60 = vmul.f32 %v1256_v58, %v674_v59 }
 0x19f   : > { %v615_v62 = vpop.f32.mrf.mxu1 }
 0x1a0   : > { %v680_v63 = vpack.c.bf16 %v679_v60, %v679_v60  ;;  %v620_v0 = vmul.f32 %v1258_v61, %v615_v62  ;;  %v1208_v62 = vld [vmem:[%s1513_s10] sm:$0xff] }
 0x1a1   : > { %978 = vmatpush.bf16.msra.mxu2 %v1208_v62 }
 0x1a2   : > { %v621_v1 = vpack.c.bf16 %v620_v0, %v620_v0  ;;  %682 = vrot.lane.b32.xlu2 %v680_v63, %s1293_s27  ;;  %s557_s27 = scalar_lea.vmem %s1506_s3, %s1145_s22  ;;  %v1243_v63 = vld [vmem:[%s1512_s9] ss:$0 sm:$0xff] }
 0x1a3   : > { %v1260_v6 = vpop.eup %1259  ;;  %v851_v24 = vld [vmem:[%s557_s27] sm:$0xff] }
 0x1a4   : > { %623 = vst.msk [vmem:[#allocation2] sm:$0xf] %vm622_vm2, %v621_v1  ;;  %v718_v4 = vpop.xlane.xlu2 %717 }
 0x1a5   : > { %v676_v3 = vpop.f32.mrf.mxu3  ;;  %1261 = vrcp.f32 %v718_v4 }
 0x1a6   : > { %1263 = vrcp.f32 %v1296_v29 }
 0x1a7   : > { %v617_v5 = vpop.f32.mrf.mxu1 }
 0x1a8   : > { %v1244_v5 = vld [vmem:[%s1514_s11] ss:$0 sm:$0xff] }
 0x1ab   : > { %v1262_v9 = vpop.eup %1261 }
 0x1ac   : > { %v1264_v30 = vpop.eup %1263 }
 0x1ad   : > { %v800_v7 = vpop.f32.mrf.mxu3  ;;  %v859_v31 = vmul.f32 32.0, %v1264_v30  ;;  %vm863_vm7 = vweird.f32 %v1264_v30 }
 0x1ae   : > { %v805_v8 = vmul.f32 %v1260_v6, %v800_v7 }
 0x1af   : > { %v737_v10 = vpop.f32.mrf.mxu1  ;;  %v860_v32 = vsub.f32 1.0, %v859_v31 }
 0x1b0   : > { %v806_v11 = vpack.c.bf16 %v805_v8, %v805_v8  ;;  %v742_v12 = vmul.f32 %v1262_v9, %v737_v10 }
 0x1b1   : > { %v861_v33 = vmul.f32 %v1264_v30, %v860_v32 }
 0x1b2   : > { %v743_v13 = vpack.c.bf16 %v742_v12, %v742_v12  ;;  %808 = vrot.lane.b32.xlu1 %v806_v11, %s1294_s28 }
 0x1b3   : > { %v862_v34 = vadd.f32 %v1264_v30, %v861_v33 }
 0x1b4   : > { %745 = vrot.lane.b32.xlu0 %v743_v13, %s1295_s17 }
 0x1b5   : > { %v802_v14 = vpop.f32.mrf.mxu3  ;;  %v864_v35 = vsel %vm863_vm7, %v1264_v30, %v862_v34 }
 0x1b7   : > { %v739_v15 = vpop.f32.mrf.mxu1 }
 0x1fc   : > { %v683_v17 = vpop.permute.xlu2 %682 }
 0x1fd   : > { %686 = vst.msk [vmem:[#allocation2] sm:$0xf] %vm685_vm3, %v683_v17 }
 0x224   : > { %v809_v20 = vpop.permute.xlu1 %808 }
 0x226   : > { %v746_v19 = vpop.permute.xlu0 %745 }
 0x227   : > { %749 = vst.msk [vmem:[#allocation2] sm:$0xf] %vm748_vm4, %v746_v19 }
 0x228   : > { %812 = vst.msk [vmem:[#allocation2] sm:$0xf] %vm811_vm5, %v809_v20 }
 0x22f   : > { %v813_v21 = vld [vmem:[#allocation2] sm:$0xf] }
 0x230   : > { %1172 = vmatmul.msk.bf16.vlgmr.msra.gmra.mxu0 %vm834_vm6, %v813_v21 }
 0x2ad   : > { %v847_v23 = vpop.f32.mrf.mxu0 }
 0x2ae   : > { %v848_v25 = vadd.f32 %v1240_v22, %v847_v23 }
 0x2b0   : > { %v852_v26 = vadd.f32 %v851_v24, %v848_v25  ;;  %v1245_v25 = vld [vmem:[%s1515_s12] ss:$0 sm:$0xff] }
 0x2b2   : > { %v855_v27 = vsel %vm834_vm6, %v852_v26, 0.0 }
 0x2b3   : > { %856 = vadd.xlane.f32.xlu2 %v855_v27  ;;  %v1246_v27 = vld [vmem:[%s1516_s13] ss:$0 sm:$0xff] }
 0x2b5   : > { %v849_v28 = vpop.f32.mrf.mxu0 }
 0x326   : > { %v857_v36 = vpop.xlane.xlu2 %856 }
 0x327   : > { %v865_v37 = vmul.f32 %v864_v35, %v857_v36 }
 0x329   : > { %v866_v38 = vsub.f32 %v852_v26, %v865_v37 }
 0x32b   : > { %v867_v39 = vmul.f32 %v866_v38, %v866_v38 }
 0x32d   : > { %v868_v40 = vsel %vm834_vm6, %v867_v39, 0.0 }
 0x32e   : > { %869 = vadd.xlane.f32.xlu0 %v868_v40 }
 0x3a1   : > { %v870_v44 = vpop.xlane.xlu0 %869 }
 0x3a2   : > { %v871_v45 = vmul.f32 %v870_v44, %v864_v35 }
 0x3a4   : > { %v872_v47 = vadd.f32 1e-05, %v871_v45 }
 0x3a6   : > { %1265 = vrsqrt.f32 %v872_v47  ;;  %vm879_vm9 = vweird.f32 %v872_v47 }
 0x3ac   : > { %v1266_v49 = vpop.eup %1265 }
 0x3ad   : > { %v874_v50 = vmul.f32 %v1266_v49, %v872_v47  ;;  %vm880_vm8 = vweird.f32 %v1266_v49 }
 0x3ae   : > { %vm881_vm10 = vmor %vm879_vm9, %vm880_vm8 }
 0x3af   : > { %v875_v51 = vmul.f32 %v1266_v49, %v874_v50 }
 0x3b1   : > { %v876_v52 = vmul.f32 0.5, %v875_v51 }
 0x3b3   : > { %v877_v53 = vsub.f32 1.5, %v876_v52 }
 0x3b5   : > { %v878_v54 = vmul.f32 %v1266_v49, %v877_v53 }
 0x3b7   : > { %v882_v56 = vsel %vm881_vm10, %v1266_v49, %v878_v54 }
 0x3b8   : > { %v883_v58 = vmul.f32 %v882_v56, %v866_v38 }
 0x3ba   : > { %v887_v59 = vmul.f32 %v1241_v55, %v883_v58 }
 0x3bc   : > { %v891_v60 = vadd.f32 %v1242_v57, %v887_v59 }
 0x3be   : > { %v892_v61 = vpack.c.bf16 %v891_v60, %v891_v60 }
 0x3c0   : > { %1181 = vmatmul.msk.bf16.vlgmr.msra.gmra.mxu1 %vm834_vm6, %v892_v61 }
 0x43d   : > { %v925_v0 = vpop.f32.mrf.mxu1 }
 0x43e   : > { %v926_v1 = vadd.f32 %v1243_v63, %v925_v0 }
 0x440   : > { %v929_v2 = vmax.f32 %v926_v1, 0.0 }
 0x442   : > { %v930_v3 = vpack.c.bf16 %v929_v2, %v929_v2 }
 0x444   : > { %1198 = vmatmul.msk.bf16.vlgmr.msra.gmra.mxu2 %vm967_vm11, %v930_v3 }
 0x445   : > { %v927_v4 = vpop.f32.mrf.mxu1 }
 0x4c7   : > { %v980_v6 = vpop.f32.mrf.mxu2 }
 0x4c8   : > { %v981_v7 = vadd.f32 %v1244_v5, %v980_v6 }
 0x4ca   : > { %v984_v8 = vadd.f32 %v981_v7, %v891_v60 }
 0x4cc   : > { %v987_v9 = vsel %vm834_vm6, %v984_v8, 0.0 }
 0x4cd   : > { %988 = vadd.xlane.f32.xlu1 %v987_v9 }
 0x4cf   : > { %v982_v10 = vpop.f32.mrf.mxu2 }
 0x540   : > { %v989_v11 = vpop.xlane.xlu1 %988 }
 0x541   : > { %v990_v12 = vmul.f32 %v989_v11, %v864_v35 }
 0x543   : > { %v991_v13 = vsub.f32 %v984_v8, %v990_v12 }
 0x545   : > { %v992_v14 = vmul.f32 %v991_v13, %v991_v13 }
 0x547   : > { %v993_v15 = vsel %vm834_vm6, %v992_v14, 0.0 }
 0x548   : > { %994 = vadd.xlane.f32.xlu2 %v993_v15 }
 0x5bb   : > { %v995_v16 = vpop.xlane.xlu2 %994 }
 0x5bc   : > { %v996_v17 = vmul.f32 %v995_v16, %v864_v35 }
 0x5be   : > { %v997_v18 = vadd.f32 1e-05, %v996_v17 }
 0x5c0   : > { %1267 = vrsqrt.f32 %v997_v18  ;;  %vm1004_vm13 = vweird.f32 %v997_v18 }
 0x5c6   : > { %v1268_v19 = vpop.eup %1267 }
 0x5c7   : > { %v999_v20 = vmul.f32 %v1268_v19, %v997_v18  ;;  %vm1005_vm12 = vweird.f32 %v1268_v19 }
 0x5c8   : > { %vm1006_vm14 = vmor %vm1004_vm13, %vm1005_vm12 }
 0x5c9   : > { %v1000_v21 = vmul.f32 %v1268_v19, %v999_v20 }
 0x5cb   : > { %v1001_v22 = vmul.f32 0.5, %v1000_v21 }
 0x5cd   : > { %v1002_v23 = vsub.f32 1.5, %v1001_v22 }
 0x5cf   : > { %v1003_v24 = vmul.f32 %v1268_v19, %v1002_v23 }
 0x5d1   : > { %v1007_v26 = vsel %vm1006_vm14, %v1268_v19, %v1003_v24 }
 0x5d2   : > { %v1008_v28 = vmul.f32 %v1007_v26, %v991_v13 }
 0x5d4   : > { %v1012_v29 = vmul.f32 %v1245_v25, %v1008_v28 }
 0x5d6   : > { %v1016_v30 = vadd.f32 %v1246_v27, %v1012_v29 }
 0x5d8   : > { %1017 = vst.msk [vmem:[%s564_s20] sm:$0xff] %vm834_vm6, %v1016_v30 }
 0x5d9 PF: > { %s24_s15 = sadd.s32 1, %s1291_s15   ;;  %s1518_s29 = smov %s1287_s30 }
 0x5da   : > { %p21_p5 = scmp.ge.s32.totalorder %s24_s15, 4   ;;  %s1519_s30 = smov %s1521_s16 }
 0x5dc   :  { %23 = sbr.rel (!%p21_p5) target bundleno = 2 (0x2), region = 124 }

</bundles_post_ra>
